<compile_context>
chip_gen: v7x
topology: tpu7x:2x2x1
jax: 0.10.0
libtpu: 0.0.40
codegen_flags: <defaults>
</compile_context>

<pallas_src>
import math

import jax
import jax.numpy as jnp
from jax.experimental import pallas as pl
from jax.experimental.pallas import tpu as pltpu


def _time_encoding_kernel(ts_ref, ip_ref, x_ref, o_ref):
    # ts_ref : (tR, 1) f32   timestamps (column)
    # ip_ref : (2, D)  f32   row 0 = 1/position_vec, row 1 = phase (0 / pi/2)
    # x_ref  : (tR, D) input ; o_ref : (tR, D) output
    inv = ip_ref[0:1, :]                                   # (1, D)
    ph = ip_ref[1:2, :]                                    # (1, D)
    arg = ts_ref[...] * inv + ph                           # (tR, D) f32
    enc = jnp.sin(arg)                                     # sin(r+pi/2) == cos(r)
    o_ref[...] = (x_ref[...].astype(jnp.float32) + enc).astype(o_ref.dtype)


# Pipeline VMEM budget (x + out + ts blocks, double-buffered).  24 MiB fits the
# 32 MiB scoped limit we request below, which is safe on v5e/v6e (128 MiB
# physical) and v7x (64 MiB physical, 32 MiB scoped default).
_PIPELINE_BUDGET_BYTES = 24 * 1024 * 1024
_VMEM_LIMIT_BYTES = 32 * 1024 * 1024
_NUM_BUFFERS = 2  # BlockSpec default double-buffering


def _choose_row_tile(N, D, x_itemsize):
    """Rows per block, sized by real dtype bytes and total pipeline footprint."""
    d_pad = -(-D // 128) * 128  # lane padding of x/out blocks in VMEM
    # Per-row VMEM bytes across one pipeline stage:
    #   x block + out block (d_pad lanes * itemsize each)
    #   + timestamps block: (tR, 1) f32 lane-pads to 128 lanes -> 512 B/row.
    per_row = d_pad * x_itemsize * 2 + 512
    tr = _PIPELINE_BUDGET_BYTES // (_NUM_BUFFERS * per_row)
    tr = max(8, (tr // 8) * 8)          # sublane-aligned
    n_pad = -(-N // 8) * 8              # never allocate a block larger than N (rounded up)
    return int(min(tr, n_pad))


def time_encoding(x, timestamps, position_vec):
    """x: [B, S, D], timestamps: [B, S], position_vec: [D]."""
    B, S, D = x.shape
    N = B * S
    x2 = x.reshape(N, D)                                   # free, contiguous
    ts2 = timestamps.reshape(N, 1).astype(jnp.float32)
    inv_pos = (1.0 / position_vec.astype(jnp.float32)).reshape(1, D)
    phase = ((jnp.arange(D) % 2).astype(jnp.float32) * (math.pi / 2.0)).reshape(1, D)
    inv_phase = jnp.concatenate([inv_pos, phase], axis=0)  # (2, D)

    x_itemsize = int(jnp.dtype(x.dtype).itemsize)
    tR = _choose_row_tile(N, D, x_itemsize)
    grid = (pl.cdiv(N, tR),)                               # single flattened parallel axis

    bytes_accessed = (
        N * D * x_itemsize * 2      # x in + out
        + N * 4                     # timestamps
        + 2 * D * 4                 # inv_pos / phase
    )

    out2 = pl.pallas_call(
        _time_encoding_kernel,
        out_shape=jax.ShapeDtypeStruct((N, D), x.dtype),
        grid_spec=pltpu.PrefetchScalarGridSpec(
            num_scalar_prefetch=0,
            grid=grid,
            in_specs=[
                pl.BlockSpec((tR, 1), lambda i: (i, 0)),   # timestamps column
                pl.BlockSpec((2, D), lambda i: (0, 0)),    # [1/position_vec; phase]
                pl.BlockSpec((tR, D), lambda i: (i, 0)),   # x
            ],
            out_specs=pl.BlockSpec((tR, D), lambda i: (i, 0)),
        ),
        compiler_params=pltpu.CompilerParams(
            dimension_semantics=("parallel",),
            vmem_limit_bytes=_VMEM_LIMIT_BYTES,
        ),
        cost_estimate=pl.CostEstimate(
            flops=4 * N * D,
            transcendentals=N * D,
            bytes_accessed=bytes_accessed,
        ),
    )(ts2, inv_phase, x2)
    return out2.reshape(B, S, D)


def _reference(x, timestamps, position_vec):
    # Direct transcription of the PyTorch forward (divide + sin/cos interleave).
    r = timestamps[..., None] / position_vec
    idx = jnp.arange(x.shape[-1])
    enc = jnp.where((idx % 2) == 0, jnp.sin(r), jnp.cos(r))
    return x + enc


if __name__ == "__main__":
    d_model = 32
    B, S = 2, 8

    # Deterministic "parameter": position_vec, exactly as built in __init__.
    position_vec = jnp.asarray(
        [math.pow(10000.0, 2.0 * (i // 2) / d_model) for i in range(d_model)],
        dtype=jnp.float32,
    )

    key = jax.random.PRNGKey(0)
    kx, kt = jax.random.split(key)
    x = jax.random.normal(kx, (B, S, d_model), dtype=jnp.float32)
    timestamps = jax.random.uniform(kt, (B, S), dtype=jnp.float32) * 100.0

    out = time_encoding(x, timestamps, position_vec)
    out = jax.block_until_ready(out)

    ref = _reference(x, timestamps, position_vec)
    assert out.shape == (B, S, d_model)
    # Slightly relaxed atol: multiply-by-reciprocal + sin(r+pi/2) differ from
    # divide + cos(r) by a couple of f32 ulps at |r| ~ 100.
    assert jnp.allclose(out, ref, atol=2e-5, rtol=1e-5), "mismatch vs reference"

    print("KERNEL_OK")
</pallas_src>

<mosaic_0001>
module attributes {stable_mosaic.version = 11 : i64} {
  func.func @_time_encoding_kernel(%arg0: i32, %arg1: memref<16x1xf32, #tpu.memory_space<vmem>>, %arg2: memref<2x32xf32, #tpu.memory_space<vmem>>, %arg3: memref<16x32xf32, #tpu.memory_space<vmem>>, %arg4: memref<16x32xf32, #tpu.memory_space<vmem>>) attributes {dimension_semantics = [#tpu.dimension_semantics<parallel>], iteration_bounds = array<i64: 1>, scalar_prefetch = 0 : i64, scratch_operands = 0 : i64, tpu.core_type = #tpu.core_type<tc>, window_params = [{transform_indices = @transform_0, window_bounds = array<i64: 16, 1>}, {pipeline_mode = #tpu.pipeline_mode<synchronous>, transform_indices = @transform_1, window_bounds = array<i64: 2, 32>}, {transform_indices = @transform_2, window_bounds = array<i64: 16, 32>}, {transform_indices = @transform_3, window_bounds = array<i64: 16, 32>}]} {
    %c0 = arith.constant 0 : index
    %c0_0 = arith.constant 0 : index
    %0 = vector.load %arg2[%c0, %c0_0] : memref<2x32xf32, #tpu.memory_space<vmem>>, vector<1x32xf32>
    %c1 = arith.constant 1 : index
    %c0_1 = arith.constant 0 : index
    %1 = vector.load %arg2[%c1, %c0_1] : memref<2x32xf32, #tpu.memory_space<vmem>>, vector<1x32xf32>
    %c0_2 = arith.constant 0 : index
    %c0_3 = arith.constant 0 : index
    %2 = vector.load %arg1[%c0_2, %c0_3] : memref<16x1xf32, #tpu.memory_space<vmem>>, vector<16x1xf32>
    %3 = vector.broadcast %2 : vector<16x1xf32> to vector<16x32xf32>
    %4 = vector.broadcast %0 : vector<1x32xf32> to vector<16x32xf32>
    %5 = arith.mulf %3, %4 : vector<16x32xf32>
    %6 = vector.broadcast %1 : vector<1x32xf32> to vector<16x32xf32>
    %7 = arith.addf %5, %6 : vector<16x32xf32>
    %8 = math.sin %7 : vector<16x32xf32>
    %c0_4 = arith.constant 0 : index
    %c0_5 = arith.constant 0 : index
    %9 = vector.load %arg3[%c0_4, %c0_5] : memref<16x32xf32, #tpu.memory_space<vmem>>, vector<16x32xf32>
    %10 = arith.addf %9, %8 : vector<16x32xf32>
    %c0_6 = arith.constant 0 : index
    %c0_7 = arith.constant 0 : index
    %11 = vector.load %arg4[%c0_6, %c0_7] : memref<16x32xf32, #tpu.memory_space<vmem>>, vector<16x32xf32>
    tpu.vector_store %arg4[%c0_6, %c0_7], %10 {strides = array<i32>} : memref<16x32xf32, #tpu.memory_space<vmem>>, vector<16x32xf32>,
    return
  }
  func.func @transform_0(%arg0: i32) -> (i32, i32) {
    %c0_i32 = arith.constant 0 : i32
    %c0_i32_0 = arith.constant 0 : i32
    return %arg0, %c0_i32 : i32, i32
  }
  func.func @transform_1(%arg0: i32) -> (i32, i32) {
    %c0_i32 = arith.constant 0 : i32
    %c0_i32_0 = arith.constant 0 : i32
    %c0_i32_1 = arith.constant 0 : i32
    return %c0_i32, %c0_i32_0 : i32, i32
  }
  func.func @transform_2(%arg0: i32) -> (i32, i32) {
    %c0_i32 = arith.constant 0 : i32
    %c0_i32_0 = arith.constant 0 : i32
    return %arg0, %c0_i32 : i32, i32
  }
  func.func @transform_3(%arg0: i32) -> (i32, i32) {
    %c0_i32 = arith.constant 0 : i32
    %c0_i32_0 = arith.constant 0 : i32
    return %arg0, %c0_i32 : i32, i32
  }
}

</mosaic_0001>

<bundles_post_ra>
// kernel: tpu_custom_call.1
= control target key start
LH: loop header
LB: loop body
LE: loop exit
PB: predicated region body
PF: predicated region fallthrough
CT: control target
= control target key end

     0   :  { %v333_v1 = vmov 0   ;;  %s463_s0 = inlined_call_operand.vmem [shape: f32[16,1], index: 0, kind: input, shape index: {}]   ;;  %s464_s1 = inlined_call_operand.vmem [shape: f32[2,32], index: 1, kind: input, shape index: {}]   ;;  %s465_s2 = inlined_call_operand.vmem [shape: f32[16,32], index: 2, kind: input, shape index: {}]   ;;  %s466_s3 = inlined_call_operand.hbm [shape: f32[16,32], index: 3, kind: output, shape index: {}]  }
   0x1   :  { %v17_v0 = vld [vmem:[%s463_s0] sm:$0xff]  ;;  %300 = vset.pattern.permute.xlu0 %v333_v1  ;;  %v18_v2 = vld [vmem:[%s463_s0 + $0x8] sm:$0xff] }
   0x2   :  { %21 = vperm.xlu0 %300, %v17_v0  }
   0x3   :  { %8 = vsyncpa [#allocation3], 0  ;;  %v272_v3 = vld [vmem:[%s464_s1] ss:$0 sm:$0xff]  ;;  %v273_v5 = vld [vmem:[%s464_s1 + $0x1] ss:$0 sm:$0xff] }
   0x4   :  { %v334_v27 = vmov 683565275   ;;  %v335_v31 = vmov 2475754826   ;;  %v336_v33 = vmov 2131351028  }
   0x5   :  { %v337_v35 = vmov 2102212464   ;;  %v338_v37 = vmov 920167782   ;;  %v339_v44 = vmov 1326507024  }
   0x6   :  { %26 = vperm.xlu0 %300, %v18_v2   ;;  %s340_s22 = smov [#allocation2]  }
   0x7   :  { %s261_s23 = sshll.u32 %s340_s22, 4  ;;  %s262_s23 = int_to_ptr.vmem [resolvable:$true] %s261_s23 }
   0x8   :  { %s309_s24 = scalar_lea.vmem %s262_s23, 256  ;;  %p314_p1 = scmp.lt.s32.totalorder %s262_s23, %s262_s23 }
   0x9   :  { %p310_p0 = scmp.ne.s32.totalorder %s262_s23, %s309_s24  ;;  %p315_p2 = scmp.lt.s32.totalorder %s309_s24, %s309_s24 }
   0xb   :  { %p316_p3 = por %p315_p2, %p314_p1 }
   0xd   :  { %p317_p4 = pnand %p316_p3, %p310_p0 }
  0x81   :  { %v22_v4 = vpop.permute.xlu0 %21 }
  0x82   :  { %v33_v6 = vmul.f32 %v272_v3, %v22_v4 }
  0x84   :  { %v375_v7 = vadd.f32 %v273_v5, %v33_v6 }
  0x85   :  { %v27_v8 = vpop.permute.xlu0 %26 }
  0x86   :  { %v41_v9 = vand.u32 2147483647, %v375_v7  ;;  %v44_v10 = vand.u32 2139095040, %v375_v7  ;;  %v34_v11 = vmul.f32 %v272_v3, %v27_v8  ;;  %vm43_vm14 = vcmp.lt.s32.totalorder %v375_v7, 0 }
  0x88   :  { %v45_v12 = vshrl.u32 %v44_v10, 23  ;;  %v379_v13 = vadd.f32 %v273_v5, %v34_v11  ;;  %v48_v14 = vand.u32 8388607, %v41_v9  ;;  %vm42_vm15 = vcmp.le.f32.partialorder %v41_v9, 0.7853982 }
  0x8a   :  { %v274_v15 = vadd.s32 4294967169, %v45_v12  ;;  %v148_v16 = vand.u32 2139095040, %v379_v13  ;;  %v49_v18 = vor.u32 8388608, %v48_v14  ;;  %v145_v20 = vand.u32 2147483647, %v379_v13 }
  0x8c   :  { %v51_v17 = vadd.s32 1, %v274_v15  ;;  %v149_v19 = vshrl.u32 %v148_v16, 23  ;;  %v385_v25 = vshll.u32 %v49_v18, 8  ;;  %v152_v29 = vand.u32 8388607, %v145_v20 }
  0x8e   :  { %vm52_vm0 = vcmp.gt.s32.totalorder %v51_v17, 0  ;;  %v278_v22 = vadd.s32 4294967169, %v149_v19  ;;  %v153_v59 = vor.u32 8388608, %v152_v29 }
  0x8f   :  { %v53_v21 = vsel %vm52_vm0, %v51_v17, 0  ;;  %vm147_vm0 = vcmp.lt.s32.totalorder %v379_v13, 0 }
  0x90   :  { %v54_v23 = vshrl.u32 %v53_v21, 5  ;;  %v55_v24 = vand.u32 31, %v53_v21  ;;  %v155_v30 = vadd.s32 1, %v278_v22  ;;  %v193_v10 = vshll.u32 %v153_v59, 8 }
  0x92   :  { %v56_v26 = vsub.s32 32, %v55_v24  ;;  %v58_v28 = vshll.u32 %v334_v27, %v55_v24  ;;  %v61_v32 = vshll.u32 %v335_v31, %v55_v24  ;;  %v64_v34 = vshll.u32 %v336_v33, %v55_v24 }
  0x93   :  { %v67_v36 = vshll.u32 %v337_v35, %v55_v24  ;;  %v70_v38 = vshll.u32 %v338_v37, %v55_v24  ;;  %vm73_vm1 = vcmp.lt.s32.totalorder %v54_v23, 1  ;;  %vm75_vm2 = vcmp.lt.s32.totalorder %v54_v23, 3 }
  0x94   :  { %v59_v39 = vshrl.u32 %v335_v31, %v56_v26  ;;  %v62_v40 = vshrl.u32 %v336_v33, %v56_v26  ;;  %v65_v41 = vshrl.u32 %v337_v35, %v56_v26  ;;  %v57_v42 = vshrl.u32 %v334_v27, %v56_v26 }
  0x95   :  { %v68_v43 = vshrl.u32 %v338_v37, %v56_v26  ;;  %v71_v45 = vshrl.u32 %v339_v44, %v56_v26  ;;  %vm156_vm3 = vcmp.gt.s32.totalorder %v155_v30, 0  ;;  %vm76_vm4 = vcmp.lt.s32.totalorder %v54_v23, 4 }
  0x96   :  { %v60_v46 = vor.u32 %v59_v39, %v58_v28  ;;  %v63_v47 = vor.u32 %v62_v40, %v61_v32  ;;  %v66_v48 = vor.u32 %v65_v41, %v64_v34  ;;  %v157_v51 = vsel %vm156_vm3, %v155_v30, 0 }
  0x97   :  { %v69_v49 = vor.u32 %v68_v43, %v67_v36  ;;  %v72_v50 = vor.u32 %v71_v45, %v70_v38  ;;  %vm74_vm5 = vcmp.lt.s32.totalorder %v54_v23, 2  ;;  %v159_v62 = vand.u32 31, %v157_v51 }
  0x98   :  { %v77_v52 = vsel %vm73_vm1, %v57_v42, %v60_v46  ;;  %v78_v53 = vsel %vm76_vm4, %v66_v48, 2102212464  ;;  %v81_v54 = vsel %vm73_vm1, %v60_v46, %v63_v47  ;;  %v85_v55 = vsel %vm73_vm1, %v63_v47, %v66_v48 }
  0x99   :  { %v79_v56 = vsel %vm75_vm2, %v63_v47, %v78_v53  ;;  %v82_v57 = vsel %vm76_vm4, %v69_v49, 920167782  ;;  %v86_v58 = vsel %vm76_vm4, %v72_v50, 1326507024  ;;  %v158_v6 = vshrl.u32 %v157_v51, 5 }
  0x9a   :  { %v83_v60 = vsel %vm75_vm2, %v66_v48, %v82_v57  ;;  %v87_v61 = vsel %vm75_vm2, %v69_v49, %v86_v58  ;;  %v80_v63 = vsel %vm74_vm5, %v77_v52, %v79_v56  ;;  %v160_v8 = vsub.s32 32, %v159_v62 }
  0x9b   :  { %v84_v0 = vsel %vm74_vm5, %v81_v54, %v83_v60  ;;  %v88_v1 = vsel %vm74_vm5, %v85_v55, %v87_v61  ;;  %v96_v11 = vmul.u32 %v385_v25, %v80_v63  ;;  %v162_v12 = vshll.u32 %v334_v27, %v159_v62 }
  0x9c   :  { %v398_v2 = vmul.u32.u64.low %v385_v25, %v88_v1  ;;  %v399_v3 = vmul.u32.u64.high %v385_v25, %v88_v1, %v398_v2  ;;  %v402_v4 = vmul.u32.u64.low %v385_v25, %v84_v0  ;;  %v403_v5 = vmul.u32.u64.high %v385_v25, %v84_v0, %v402_v4 }
  0x9d   :  { %v165_v14 = vshll.u32 %v335_v31, %v159_v62  ;;  %v168_v15 = vshll.u32 %v336_v33, %v159_v62  ;;  %v163_v16 = vshrl.u32 %v335_v31, %v160_v8  ;;  %v166_v17 = vshrl.u32 %v336_v33, %v160_v8 }
  0x9e   :  { %v169_v18 = vshrl.u32 %v337_v35, %v160_v8  ;;  %v171_v19 = vshll.u32 %v337_v35, %v159_v62  ;;  %vm98_vm6 = vc.u32 %v399_v3, %v402_v4  ;;  %v99_v21 = vadd.s32 1, %v403_v5 }
  0x9f   :  { %v172_v22 = vshrl.u32 %v338_v37, %v160_v8  ;;  %v174_v23 = vshll.u32 %v338_v37, %v159_v62  ;;  %v164_v24 = vor.u32 %v163_v16, %v162_v12  ;;  %v167_v26 = vor.u32 %v166_v17, %v165_v14 }
  0xa0   :  { %v170_v28 = vor.u32 %v169_v18, %v168_v15  ;;  %v175_v29 = vshrl.u32 %v339_v44, %v160_v8  ;;  %v100_v25 = vsel %vm98_vm6, %v99_v21, %v403_v5  ;;  %vm177_vm7 = vcmp.lt.s32.totalorder %v158_v6, 1 }
  0xa1   :  { %v173_v30 = vor.u32 %v172_v22, %v171_v19  ;;  %vm180_vm8 = vcmp.lt.s32.totalorder %v158_v6, 4  ;;  %v101_v31 = vadd.s32 %v100_v25, %v96_v11  ;;  %vm179_vm9 = vcmp.lt.s32.totalorder %v158_v6, 3 }
  0xa2   :  { %v176_v32 = vor.u32 %v175_v29, %v174_v23  ;;  %v182_v33 = vsel %vm180_vm8, %v170_v28, 2102212464  ;;  %v161_v34 = vshrl.u32 %v334_v27, %v160_v8  ;;  %v185_v35 = vsel %vm177_vm7, %v164_v24, %v167_v26 }
  0xa3   :  { %v186_v36 = vsel %vm180_vm8, %v173_v30, 920167782  ;;  %v189_v38 = vsel %vm177_vm7, %v167_v26, %v170_v28  ;;  %v102_v39 = vadd.s32 536870912, %v101_v31  ;;  %vm178_vm10 = vcmp.lt.s32.totalorder %v158_v6, 2 }
  0xa4   :  { %v187_v37 = vsel %vm179_vm9, %v170_v28, %v186_v36  ;;  %v190_v40 = vsel %vm180_vm8, %v176_v32, 1326507024  ;;  %v181_v41 = vsel %vm177_vm7, %v161_v34, %v164_v24  ;;  %v183_v42 = vsel %vm179_vm9, %v167_v26, %v182_v33 }
  0xa5   :  { %v188_v43 = vsel %vm178_vm10, %v185_v35, %v187_v37  ;;  %v191_v44 = vsel %vm179_vm9, %v173_v30, %v190_v40  ;;  %v103_v45 = vshrl.u32 %v102_v39, 30  ;;  %v184_v51 = vsel %vm178_vm10, %v181_v41, %v183_v42 }
  0xa6   :  { %v192_v46 = vsel %vm178_vm10, %v189_v38, %v191_v44  ;;  %v413_v47 = vmul.u32.u64.low %v193_v10, %v188_v43  ;;  %v414_v48 = vmul.u32.u64.high %v193_v10, %v188_v43, %v413_v47  ;;  %v200_v54 = vmul.u32 %v193_v10, %v184_v51 }
  0xa7   :  { %v416_v49 = vmul.u32.u64.low %v193_v10, %v192_v46  ;;  %v417_v50 = vmul.u32.u64.high %v193_v10, %v192_v46, %v416_v49  ;;  %v104_v27 = vshll.u32 %v103_v45, 30  ;;  %v97_v2 = vadd.s32 %v402_v4, %v399_v3 }
  0xa8   :  { %v203_v53 = vadd.s32 1, %v414_v48  ;;  %v127_v24 = vsub.s32 4, %v103_v45  ;;  %vm432_vm1 = vcmp.le.f32.partialorder %v145_v20, 0.7853982  ;;  %vm133_vm5 = vweird.f32 %v375_v7 }
  0xa9   :  { %v105_v52 = vsub.s32 %v101_v31, %v104_v27  ;;  %vm202_vm11 = vc.u32 %v417_v50, %v413_v47  ;;  %v201_v3 = vadd.s32 %v413_v47, %v417_v50  ;;  %vm253_vm6 = vcmask 261120  }
  0xaa   :  { %v204_v56 = vsel %vm202_vm11, %v203_v53, %v414_v48  ;;  %v128_v33 = vsel %vm43_vm14, %v127_v24, %v103_v45  ;;  %vm237_vm10 = vweird.f32 %v379_v13 }
  0xab   :  { %v107_v55 = vsub.s32 0, %v105_v52  ;;  %v205_v57 = vadd.s32 %v204_v56, %v200_v54  ;;  %v130_v38 = vsel %vm42_vm15, 0, %v128_v33  ;;  %v249_v54 = vld [vmem:[%s465_s2] sm:$0xff] }
  0xac   :  { %v134_v41 = vadd.s32 3, %v130_v38 }
  0xad   :  { %v275_v58 = vmin.u32 %v107_v55, %v105_v52  ;;  %v206_v59 = vadd.s32 536870912, %v205_v57 }
  0xae   :  { %v135_v46 = vand.u32 3, %v134_v41 }
  0xaf   :  { %v109_v60 = vclz %v275_v58  ;;  %v207_v61 = vshrl.u32 %v206_v59, 30 }
  0xb0   :  { %vm140_vm2 = vcmp.eq.s32.totalorder %v135_v46, 2  ;;  %vm137_vm3 = vcmp.eq.s32.totalorder %v135_v46, 0  ;;  %vm136_vm4 = vcmp.lt.s32.totalorder %v135_v46, 2 }
  0xb1   :  { %v276_v62 = vadd.s32 4294967294, %v109_v60  ;;  %v208_v63 = vshll.u32 %v207_v61, 30  ;;  %v231_v43 = vsub.s32 4, %v207_v61 }
  0xb3   :  { %vm277_vm12 = vcmp.lt.s32.totalorder %v276_v62, 0  ;;  %v209_v1 = vsub.s32 %v205_v57, %v208_v63  ;;  %v232_v47 = vsel %vm147_vm0, %v231_v43, %v207_v61 }
  0xb4   :  { %v112_v0 = vsel %vm277_vm12, 0, %v276_v62  ;;  %v234_v51 = vsel %vm432_vm1, 0, %v232_v47 }
  0xb5   :  { %v113_v5 = vsub.s32 32, %v112_v0  ;;  %v117_v6 = vsub.s32 4294967266, %v112_v0  ;;  %v211_v8 = vsub.s32 0, %v209_v1  ;;  %v114_v10 = vshll.u32 %v105_v52, %v112_v0 }
  0xb6   :  { %v238_v55 = vadd.s32 3, %v234_v51 }
  0xb7   :  { %v115_v11 = vshrl.u32 %v97_v2, %v113_v5  ;;  %v118_v12 = vadd.s32 127, %v117_v6  ;;  %v279_v14 = vmin.u32 %v211_v8, %v209_v1 }
  0xb8   :  { %v239_v59 = vand.u32 3, %v238_v55 }
  0xb9   :  { %v116_v15 = vor.u32 %v115_v11, %v114_v10  ;;  %v119_v16 = vshll.u32 %v118_v12, 23  ;;  %v213_v17 = vclz %v279_v14 }
  0xba   :  { %vm244_vm7 = vcmp.eq.s32.totalorder %v239_v59, 2  ;;  %vm241_vm8 = vcmp.eq.s32.totalorder %v239_v59, 0  ;;  %vm240_vm9 = vcmp.lt.s32.totalorder %v239_v59, 2 }
  0xbb   :  { %v120_v18 = vor.u32 4788187, %v119_v16  ;;  %v280_v19 = vadd.s32 4294967294, %v213_v17  ;;  %v123_v22 = vcvt.s32.f32 %v116_v15 }
  0xbd   :  { %v121_v21 = vand.u32 2147483647, %v120_v18  ;;  %vm281_vm13 = vcmp.lt.s32.totalorder %v280_v19, 0 }
  0xbe   :  { %v216_v26 = vsel %vm281_vm13, 0, %v280_v19 }
  0xbf   :  { %v124_v23 = vmul.f32 %v123_v22, %v121_v21  ;;  %v217_v4 = vsub.s32 32, %v216_v26  ;;  %v221_v28 = vsub.s32 4294967266, %v216_v26  ;;  %v218_v25 = vshll.u32 %v209_v1, %v216_v26 }
  0xc1   :  { %v125_v29 = vxor.u32 2147483648, %v124_v23  ;;  %v219_v30 = vshrl.u32 %v201_v3, %v217_v4  ;;  %v222_v31 = vadd.s32 127, %v221_v28 }
  0xc3   :  { %v126_v32 = vsel %vm43_vm14, %v125_v29, %v124_v23  ;;  %v220_v35 = vor.u32 %v219_v30, %v218_v25  ;;  %v223_v36 = vshll.u32 %v222_v31, 23 }
  0xc4   :  { %v129_v34 = vsel %vm42_vm15, %v375_v7, %v126_v32  ;;  %v250_v7 = vld [vmem:[%s465_s2 + $0x8] sm:$0xff] }
  0xc5   :  { %301 = vcosq.f32 %v129_v34  ;;  %v224_v39 = vor.u32 4788187, %v223_v36  ;;  %v227_v40 = vcvt.s32.f32 %v220_v35 }
  0xc6   :  { %303 = vsinq.f32 %v129_v34 }
  0xc7   :  { %v225_v37 = vand.u32 2147483647, %v224_v39 }
  0xc9   :  { %v228_v42 = vmul.f32 %v227_v40, %v225_v37 }
  0xcb   :  { %v229_v44 = vxor.u32 2147483648, %v228_v42 }
  0xcd   :  { %v230_v45 = vsel %vm147_vm0, %v229_v44, %v228_v42 }
  0xce   :  { %v233_v49 = vsel %vm432_vm1, %v379_v13, %v230_v45 }
  0xcf   :  { %v302_v48 = vpop.eup %301  ;;  %305 = vcosq.f32 %v233_v49 }
  0xd0   :  { %v304_v50 = vpop.eup %303  ;;  %v141_v27 = vxor.u32 2147483648, %v302_v48  ;;  %307 = vsinq.f32 %v233_v49 }
  0xd1   :  { %v138_v52 = vxor.u32 2147483648, %v304_v50 }
  0xd2   :  { %v142_v20 = vsel %vm140_vm2, %v141_v27, %v304_v50 }
  0xd3   :  { %v139_v53 = vsel %vm137_vm3, %v302_v48, %v138_v52 }
  0xd4   :  { %v143_v56 = vsel %vm136_vm4, %v139_v53, %v142_v20 }
  0xd5   :  { %v144_v57 = vsel %vm133_vm5, nan, %v143_v56 }
  0xd6   :  { %v251_v58 = vadd.f32 %v249_v54, %v144_v57 }
  0xd8   :  { %254 = vst.msk [vmem:[#allocation2] sm:$0xff] %vm253_vm6, %v251_v58 }
  0xd9   :  { %v306_v60 = vpop.eup %305 }
  0xda   :  { %v308_v61 = vpop.eup %307  ;;  %v245_v62 = vxor.u32 2147483648, %v306_v60 }
  0xdb   :  { %v242_v63 = vxor.u32 2147483648, %v308_v61 }
  0xdc   :  { %v246_v0 = vsel %vm244_vm7, %v245_v62, %v308_v61 }
  0xdd   :  { %v243_v1 = vsel %vm241_vm8, %v306_v60, %v242_v63 }
  0xde   :  { %v247_v2 = vsel %vm240_vm9, %v243_v1, %v246_v0 }
  0xdf   :  { %v248_v5 = vsel %vm237_vm10, nan, %v247_v2 }
  0xe0   :  { %v252_v6 = vadd.f32 %v250_v7, %v248_v5 }
  0xe2   :  { %255 = vst.msk [vmem:[#allocation2 + $0x8] sm:$0xff] %vm253_vm6, %v252_v6 }
  0xe3   :  { %320 = shalt.err (!%p317_p4)
}
  0xe4   :  { %s321_s2 = scalar_lea.hbm %s466_s3, 256 }
  0xe5   :  { %p322_p5 = scmp.ne.s32.totalorder %s466_s3, %s321_s2  ;;  %p325_p6 = scmp.lt.u32.totalorder %s321_s2, %s466_s3 }
  0xe7   :  { %p327_p7 = pnand %p325_p6, %p322_p5 }
  0xe9   :  { %330 = shalt.err (!%p327_p7)
}
  0xea   :  { %s341_s4 = smov 128   ;;  %s342_s5 = smov 8  }
  0xeb   :  { %267 = dma.vmem_to_hbm [thread:$0]  %s262_s23, 256, %s466_s3, [#allocation3], %s341_s4, %s341_s4, %s342_s5  }
  0xec   :  { %331 = dma.done.wait [#allocation3], 256  }
  0xed   :  { %332 = vsyncadd [#allocation3], 4294967040 }
  0xee   :  { %271 = vsyncpa [#allocation3], 1 }

</bundles_post_ra>
